<compile_context>
chip_gen: v6e
topology: v6e:2x2x1
jax: 0.10.0
libtpu: 0.0.40
codegen_flags: <defaults>
</compile_context>

<pallas_src>
import functools

import jax
import jax.numpy as jnp
from jax.experimental import pallas as pl
from jax.experimental.pallas import tpu as pltpu


def _tv_partial_kernel(x_ref, mask_ref, h_out_ref, w_out_ref, *,
                       chunk_rows, num_chunks, l, w):
    """Partial h/w TV sums for one (block_rows, H*W) lane-dense block.

    The block is processed in row-chunks so temporaries stay a few hundred
    KiB regardless of the (pipelined) DMA block size.
    """
    # (1, L-1) f32: 1.0 where the flat pair (j, j+1) stays inside one image
    # row.  Loaded once per grid step; broadcast over the chunk's sublanes.
    mw = mask_ref[...]

    def body(i, carry):
        h_acc, w_acc = carry
        start = i * chunk_rows
        if isinstance(start, jax.Array):
            start = pl.multiple_of(start, chunk_rows)
        xc = x_ref[pl.ds(start, chunk_rows), :].astype(jnp.float32)
        # H-direction: neighbour is `w` elements ahead on the flattened H*W
        # axis; every index in [0, L-w) is a valid pair -> no mask needed.
        dh = xc[:, w:] - xc[:, : l - w]
        # W-direction: neighbour is 1 element ahead; pairs that cross an
        # image-row boundary are zeroed by the precomputed mask.
        dw = xc[:, 1:] - xc[:, : l - 1]
        h_acc = h_acc + jnp.sum(dh * dh)
        w_acc = w_acc + jnp.sum(dw * dw * mw)
        return h_acc, w_acc

    h_tv, w_tv = jax.lax.fori_loop(
        0, num_chunks, body,
        (jnp.float32(0.0), jnp.float32(0.0)),
        unroll=num_chunks <= 8,
    )

    # Broadcast the scalar partials into lane/sublane-aligned output tiles.
    h_out_ref[...] = jnp.zeros((1, 8, 128), jnp.float32) + h_tv
    w_out_ref[...] = jnp.zeros((1, 8, 128), jnp.float32) + w_tv


def tv_loss(x, tv_loss_weight=1.0):
    """TV loss matching torch TVLoss.forward. x: (N, C, H, W)."""
    n, c, h, w = x.shape
    count_h = c * (h - 1) * w   # h == 1 -> div-by-zero, same as the PyTorch module
    count_w = c * h * (w - 1)

    nc = n * c
    l = h * w
    xf = x.reshape(nc, l)                        # lane-dense last axis

    itemsize = jnp.dtype(x.dtype).itemsize
    row_align = 8 * max(1, 4 // itemsize)        # 8 rows f32, 16 rows bf16
    row_bytes = l * itemsize
    rows_aligned = -(-nc // row_align) * row_align

    # In-kernel chunk: ~256 KiB of f32 per chunk bounds temporaries/spills.
    chunk_rows = max(row_align,
                     (((256 << 10) // (l * 4)) // row_align) * row_align)
    chunk_rows = int(min(chunk_rows, rows_aligned))

    # Per-generation per-block budget: bigger blocks on 128 MiB-VMEM chips
    # (v5e/v6e), conservative 4 MiB on v7x (64 MiB VMEM per TensorCore).
    try:
        vmem_cap = int(getattr(pltpu.get_tpu_info(), "vmem_capacity_bytes",
                               64 << 20))
    except Exception:
        vmem_cap = 64 << 20
    gen_budget = (8 << 20) if vmem_cap >= (100 << 20) else (4 << 20)

    # Keep >= ~8 pipelined grid steps when the data allows, never below one
    # chunk, and always >= 2 blocks so megacore (v7x) has work for each TC.
    total_bytes = max(rows_aligned, 2 * chunk_rows) * row_bytes
    budget_bytes = min(gen_budget, max(chunk_rows * row_bytes, total_bytes // 8))
    block_rows = int(max(chunk_rows,
                         ((budget_bytes // row_bytes) // chunk_rows) * chunk_rows))
    num_blocks = int(max(2, -(-nc // block_rows)))
    nc_pad = num_blocks * block_rows
    num_chunks = block_rows // chunk_rows
    # TODO(synk): for very large H*W (a single flattened row approaching the
    # VMEM budget) add a second grid axis over L with a w-element halo.

    if nc_pad != nc:
        # Zero rows contribute exactly 0 to both intra-row difference sums.
        xf = jnp.pad(xf, ((0, nc_pad - nc), (0, 0)))

    # Precomputed W-boundary mask: 1.0 where the flat pair (j, j+1) lies in
    # the same image row.  Constant block index -> DMA'd once, reused.
    col = jnp.arange(l - 1, dtype=jnp.int32) % w
    mask_w = (col != (w - 1)).astype(jnp.float32).reshape(1, l - 1)

    block_bytes = block_rows * row_bytes
    chunk_f32_bytes = chunk_rows * l * 4
    temp_bytes = 6 * chunk_f32_bytes + 4 * (l * 4)
    vmem_limit = int(min(48 << 20,
                         max(32 << 20, 2 * block_bytes + temp_bytes + (2 << 20))))

    kernel = functools.partial(_tv_partial_kernel, chunk_rows=chunk_rows,
                               num_chunks=num_chunks, l=l, w=w)

    h_part, w_part = pl.pallas_call(
        kernel,
        out_shape=(
            jax.ShapeDtypeStruct((num_blocks, 8, 128), jnp.float32),
            jax.ShapeDtypeStruct((num_blocks, 8, 128), jnp.float32),
        ),
        grid_spec=pltpu.PrefetchScalarGridSpec(
            num_scalar_prefetch=0,
            grid=(num_blocks,),
            in_specs=[
                pl.BlockSpec((block_rows, l), lambda i: (i, 0)),
                pl.BlockSpec((1, l - 1), lambda i: (0, 0)),
            ],
            out_specs=[
                pl.BlockSpec((1, 8, 128), lambda i: (i, 0, 0)),
                pl.BlockSpec((1, 8, 128), lambda i: (i, 0, 0)),
            ],
        ),
        compiler_params=pltpu.CompilerParams(
            dimension_semantics=("parallel",),
            vmem_limit_bytes=vmem_limit,
        ),
    )(xf, mask_w)

    h_tv = jnp.sum(h_part[:, 0, 0])
    w_tv = jnp.sum(w_part[:, 0, 0])

    # jnp arithmetic so tv_loss_weight may be a Python number or traced value.
    return tv_loss_weight * 2.0 * (h_tv / count_h + w_tv / count_w) / n


def _tv_loss_ref(x, tv_loss_weight=1.0):
    """Pure-JAX reference mirroring the PyTorch module exactly."""
    n, c, h, w = x.shape
    count_h = c * (h - 1) * w
    count_w = c * h * (w - 1)
    xf = x.astype(jnp.float32)
    h_tv = jnp.sum((xf[:, :, 1:, :] - xf[:, :, : h - 1, :]) ** 2)
    w_tv = jnp.sum((xf[:, :, :, 1:] - xf[:, :, :, : w - 1]) ** 2)
    return tv_loss_weight * 2 * (h_tv / count_h + w_tv / count_w) / n


if __name__ == "__main__":
    key = jax.random.PRNGKey(0)
    # Small shapes consistent with TVLoss forward: NCHW.
    x = jax.random.normal(key, (2, 4, 16, 16), dtype=jnp.float32)

    out = jax.block_until_ready(tv_loss(x, tv_loss_weight=1.0))
    ref = jax.block_until_ready(_tv_loss_ref(x, tv_loss_weight=1.0))
    assert jnp.allclose(out, ref, rtol=1e-5, atol=1e-5), (out, ref)

    # Second small case exercising a >2-block parallel grid (N*C = 32 rows).
    x2 = jax.random.normal(jax.random.PRNGKey(0), (4, 8, 16, 16), jnp.float32)
    out2 = jax.block_until_ready(tv_loss(x2, tv_loss_weight=0.5))
    ref2 = jax.block_until_ready(_tv_loss_ref(x2, tv_loss_weight=0.5))
    assert jnp.allclose(out2, ref2, rtol=1e-5, atol=1e-5), (out2, ref2)

    print("KERNEL_OK")
</pallas_src>

<mosaic_0001>
module attributes {stable_mosaic.version = 11 : i64} {
  func.func @_tv_partial_kernel(%arg0: i32, %arg1: memref<8x256xf32, #tpu.memory_space<vmem>>, %arg2: memref<1x255xf32, #tpu.memory_space<vmem>>, %arg3: memref<1x8x128xf32, #tpu.memory_space<vmem>>, %arg4: memref<1x8x128xf32, #tpu.memory_space<vmem>>) attributes {dimension_semantics = [#tpu.dimension_semantics<parallel>], iteration_bounds = array<i64: 2>, scalar_prefetch = 0 : i64, scratch_operands = 0 : i64, tpu.core_type = #tpu.core_type<tc>, window_params = [{transform_indices = @transform_0, window_bounds = array<i64: 8, 256>}, {pipeline_mode = #tpu.pipeline_mode<synchronous>, transform_indices = @transform_1, window_bounds = array<i64: 1, 255>}, {transform_indices = @transform_2, window_bounds = array<i64: 1, 8, 128>}, {transform_indices = @transform_3, window_bounds = array<i64: 1, 8, 128>}]} {
    %c0 = arith.constant 0 : index
    %c0_0 = arith.constant 0 : index
    %0 = vector.load %arg2[%c0, %c0_0] : memref<1x255xf32, #tpu.memory_space<vmem>>, vector<1x255xf32>
    %cst = arith.constant 0.000000e+00 : f32
    %cst_1 = arith.constant 0.000000e+00 : f32
    %c0_i32 = arith.constant 0 : i32
    %c8_i32 = arith.constant 8 : i32
    %1 = arith.muli %c0_i32, %c8_i32 : i32
    %2 = tpu.assume_multiple %1, 8 : i32
    %3 = arith.index_cast %2 : i32 to index
    %c0_2 = arith.constant 0 : index
    %4 = vector.load %arg1[%3, %c0_2] : memref<8x256xf32, #tpu.memory_space<vmem>>, vector<8x256xf32>
    %5 = vector.extract_strided_slice %4 {offsets = [0, 16], sizes = [8, 240], strides = [1, 1]} : vector<8x256xf32> to vector<8x240xf32>
    %6 = vector.extract_strided_slice %4 {offsets = [0, 0], sizes = [8, 240], strides = [1, 1]} : vector<8x256xf32> to vector<8x240xf32>
    %7 = arith.subf %5, %6 : vector<8x240xf32>
    %8 = vector.extract_strided_slice %4 {offsets = [0, 1], sizes = [8, 255], strides = [1, 1]} : vector<8x256xf32> to vector<8x255xf32>
    %9 = vector.extract_strided_slice %4 {offsets = [0, 0], sizes = [8, 255], strides = [1, 1]} : vector<8x256xf32> to vector<8x255xf32>
    %10 = arith.subf %8, %9 : vector<8x255xf32>
    %11 = arith.mulf %7, %7 : vector<8x240xf32>
    %12 = vector.shape_cast %11 : vector<8x240xf32> to vector<1x8x240xf32>
    %cst_3 = arith.constant dense<0.000000e+00> : vector<1xf32>
    %13 = vector.multi_reduction <add>, %12, %cst_3 [1, 2] : vector<1x8x240xf32> to vector<1xf32>
    %14 = vector.shape_cast %13 : vector<1xf32> to vector<1x1x1xf32>
    %15 = vector.extract %14[0, 0, 0] : f32 from vector<1x1x1xf32>
    %16 = arith.addf %cst, %15 : f32
    %17 = arith.mulf %10, %10 : vector<8x255xf32>
    %18 = vector.broadcast %0 : vector<1x255xf32> to vector<8x255xf32>
    %19 = arith.mulf %17, %18 : vector<8x255xf32>
    %20 = vector.shape_cast %19 : vector<8x255xf32> to vector<1x8x255xf32>
    %cst_4 = arith.constant dense<0.000000e+00> : vector<1xf32>
    %21 = vector.multi_reduction <add>, %20, %cst_4 [1, 2] : vector<1x8x255xf32> to vector<1xf32>
    %22 = vector.shape_cast %21 : vector<1xf32> to vector<1x1x1xf32>
    %23 = vector.extract %22[0, 0, 0] : f32 from vector<1x1x1xf32>
    %24 = arith.addf %cst_1, %23 : f32
    %c1_i32 = arith.constant 1 : i32
    %cst_5 = arith.constant 0.000000e+00 : f32
    %25 = vector.broadcast %cst_5 : f32 to vector<1x8x128xf32>
    %26 = vector.broadcast %16 : f32 to vector<1x8x128xf32>
    %27 = arith.addf %25, %26 : vector<1x8x128xf32>
    %c0_6 = arith.constant 0 : index
    %c0_7 = arith.constant 0 : index
    %c0_8 = arith.constant 0 : index
    %28 = vector.load %arg3[%c0_6, %c0_7, %c0_8] : memref<1x8x128xf32, #tpu.memory_space<vmem>>, vector<1x8x128xf32>
    tpu.vector_store %arg3[%c0_6, %c0_7, %c0_8], %27 {strides = array<i32>} : memref<1x8x128xf32, #tpu.memory_space<vmem>>, vector<1x8x128xf32>,
    %cst_9 = arith.constant 0.000000e+00 : f32
    %29 = vector.broadcast %cst_9 : f32 to vector<1x8x128xf32>
    %30 = vector.broadcast %24 : f32 to vector<1x8x128xf32>
    %31 = arith.addf %29, %30 : vector<1x8x128xf32>
    %c0_10 = arith.constant 0 : index
    %c0_11 = arith.constant 0 : index
    %c0_12 = arith.constant 0 : index
    %32 = vector.load %arg4[%c0_10, %c0_11, %c0_12] : memref<1x8x128xf32, #tpu.memory_space<vmem>>, vector<1x8x128xf32>
    tpu.vector_store %arg4[%c0_10, %c0_11, %c0_12], %31 {strides = array<i32>} : memref<1x8x128xf32, #tpu.memory_space<vmem>>, vector<1x8x128xf32>,
    return
  }
  func.func @transform_0(%arg0: i32) -> (i32, i32) {
    %c0_i32 = arith.constant 0 : i32
    %c0_i32_0 = arith.constant 0 : i32
    return %arg0, %c0_i32 : i32, i32
  }
  func.func @transform_1(%arg0: i32) -> (i32, i32) {
    %c0_i32 = arith.constant 0 : i32
    %c0_i32_0 = arith.constant 0 : i32
    %c0_i32_1 = arith.constant 0 : i32
    return %c0_i32, %c0_i32_0 : i32, i32
  }
  func.func @transform_2(%arg0: i32) -> (i32, i32, i32) {
    %c0_i32 = arith.constant 0 : i32
    %c0_i32_0 = arith.constant 0 : i32
    %c0_i32_1 = arith.constant 0 : i32
    return %arg0, %c0_i32, %c0_i32_0 : i32, i32, i32
  }
  func.func @transform_3(%arg0: i32) -> (i32, i32, i32) {
    %c0_i32 = arith.constant 0 : i32
    %c0_i32_0 = arith.constant 0 : i32
    %c0_i32_1 = arith.constant 0 : i32
    return %arg0, %c0_i32, %c0_i32_0 : i32, i32, i32
  }
}

</mosaic_0001>

<bundles_post_ra>
// kernel: tpu_custom_call.1
= control target key start
LH: loop header
LB: loop body
LE: loop exit
PB: predicated region body
PF: predicated region fallthrough
CT: control target
= control target key end

     0   :  { %9 = vsyncpa [#allocation3], 0  ;;  %s937_s0 = inlined_call_operand.hbm [shape: f32[16,256], index: 0, kind: input, shape index: {}]   ;;  %s938_s1 = inlined_call_operand.hbm [shape: f32[1,255], index: 1, kind: input, shape index: {}]   ;;  %s939_s2 = inlined_call_operand.hbm [shape: f32[2,8,128], index: 2, kind: output, shape index: {0}]   ;;  %s940_s3 = inlined_call_operand.hbm [shape: f32[2,8,128], index: 3, kind: output, shape index: {1}]  }
   0x1   :  { %11 = vsyncpa [#allocation3 + $0x1], 0 }
   0x2   :  { %12 = vsyncpa [#allocation6], 0 }
   0x3   :  { %13 = vsyncpa [#allocation4], 0 }
   0x4   :  { %15 = vsyncpa [#allocation4 + $0x1], 0 }
   0x5   :  { %16 = vsyncpa [#allocation9], 0 }
   0x6   :  { %18 = vsyncpa [#allocation9 + $0x1], 0  ;;  %s726_s12 = smov 0   ;;  %s728_s13 = smov 0  }
   0x7   :  { %s730_s14 = smov 0   ;;  %s732_s15 = smov 0  }
   0x8 LB: > { %s747_s16 = sadd.s32 4294967295, %s696_s15   ;;  %s455_s17 = sadd.s32 4294967294, %s696_s15   ;;  %s696_s15 = sphi %s732_s15, %s963_s15   ;;  %s692_s14 = sphi %s730_s14, %s962_s14   ;;  %s688_s13 = sphi %s728_s13, %s961_s13   ;;  %s684_s12 = sphi %s726_s12, %s960_s12  }
   0x9   : > { %p44_p0 = scmp.ne.s32.totalorder %s688_s13, %s684_s12  ;;  %p941_p1 = scmp.eq.s32.totalorder %s747_s16, 0 }
   0xa   : > { %p95_p3 = scmp.eq.s32.totalorder %s455_s17, 1  ;;  %p456_p5 = scmp.ge.s32.totalorder %s696_s15, 1 }
   0xb   : > { %p756_p4 = por %p941_p1, %p44_p0  ;;  %p128_p7 = scmp.lt.s32.totalorder %s696_s15, 3 }
   0xc   : > { %p761_p6 = por %p95_p3, %p44_p0  ;;  %s698_s21 = smov [#allocation5]  }
   0xd   : > { %s945_s18 = scalar_select %p756_p4, 1, 0 }
   0xe   : > { %s946_s19 = scalar_select %p761_p6, 1, 0 }
   0xf   : > { %p766_p8 = pnand %p456_p5, %p128_p7  ;;  %s141_s22 = sshll.u32 %s698_s21, 4  ;;  %s142_s22 = int_to_ptr.vmem [resolvable:$true] %s141_s22 }
  0x10   : > { %s774_s23 = sadd.s32 1, %s696_s15   ;;  %s31_s27 = sadd.s32 1, %s692_s14 }
  0x11   : > { %s947_s20 = scalar_select %p766_p8, 1, 0 }
  0x12   : > { %p488_p10 = pneg %p766_p8  ;;  %s28_s25 = ssub.s32 %s696_s15, %s774_s23 }
  0x13   : > { %p784_p12 = scmp.eq.s32.totalorder %s28_s25, 0  ;;  %p38_p13 = scmp.ne.s32.totalorder %s692_s14, %s688_s13 }
  0x14   : > { %p778_p11 = pnand %p488_p10, %p941_p1  ;;  %s555_s28 = scalar_lea.vmem %s142_s22, 32 }
  0x15   : > { %p556_p3 = scmp.ne.s32.totalorder %s142_s22, %s555_s28  ;;  %p563_p9 = scmp.lt.s32.totalorder %s142_s22, %s142_s22 }
  0x16   : > { %p546_p0 = pneg %p778_p11  ;;  %p564_p2 = scmp.lt.s32.totalorder %s555_s28, %s555_s28 }
  0x18   : > { %p558_p5 = pnand %p556_p3, %p546_p0  ;;  %p565_p10 = por %p564_p2, %p563_p9 }
  0x1a   : > { %p559_p7 = pneg %p558_p5 }
  0x1c   : > { %p566_p1 = pnand %p565_p10, %p559_p7 }
  0x1e   : > { %569 = shalt.err (!%p566_p1)
}
  0x1f   : > { %491 = dma.hbm_to_vmem [thread:$0]  (!%p778_p11), %s938_s1, 32, %s142_s22, [#allocation6]  }
  0x20   : > { %s801_s4 = scalar_select %p784_p12, %s692_s14, %s31_s27  }
  0x21   : > { %p39_p1 = scmp.eq.s32.totalorder %s696_s15, 0  ;;  %p950_p2 = scmp.eq.s32.totalorder %s747_s16, 1 }
  0x22   : > { %p504_p0 = scmp.lt.s32.totalorder %s696_s15, 2  ;;  %s152_s6 = sand.u32 1, %s692_s14  }
  0x23   : > { %p809_p9 = por %p950_p2, %p38_p13  ;;  %p40_p3 = por %p39_p1, %p38_p13 }
  0x24   : > { %s459_s7 = sshll.u32 %s152_s6, 4  ;;  %s473_s8 = sshll.u32 %s696_s15, 8 }
  0x25   : > { %s951_s5 = scalar_select %p809_p9, 1, 0 }
  0x26   : > { %s822_s11 = scalar_lea.hbm %s937_s0, %s473_s8  ;;  %s156_s17 = scalar_lea.vmem [#allocation2], %s459_s7 }
  0x27   : > { %s164_s21 = sshll.u32 %s156_s17, 4  ;;  %p824_p11 = pnand %p504_p0, %p40_p3  ;;  %s165_s21 = int_to_ptr.vmem [resolvable:$true] %s164_s21 }
  0x28   : > { %s153_s24 = scalar_lea.sflag [#allocation3], %s152_s6  ;;  %s570_s25 = scalar_lea.hbm %s822_s11, 256 }
  0x29   : > { %p571_p12 = scmp.ne.s32.totalorder %s822_s11, %s570_s25  ;;  %p572_p13 = pneg %p824_p11 }
  0x2a   : > { %s575_s28 = scalar_lea.hbm %s937_s0, 512  ;;  %p576_p10 = scmp.lt.s32.totalorder %s822_s11, %s937_s0 }
  0x2b   : > { %p573_p5 = pnand %p572_p13, %p571_p12  ;;  %p577_p1 = scmp.lt.s32.totalorder %s575_s28, %s570_s25 }
  0x2d   : > { %p574_p7 = pneg %p573_p5  ;;  %p578_p2 = por %p577_p1, %p576_p10 }
  0x2f   : > { %p579_p0 = pnand %p578_p2, %p574_p7 }
  0x31   : > { %582 = shalt.err (!%p579_p0)
}
  0x32   : > { %s583_s7 = scalar_lea.vmem %s165_s21, 256  ;;  %s699_s6 = smov [#allocation2]  }
  0x33   : > { %p584_p3 = scmp.ne.s32.totalorder %s165_s21, %s583_s7  ;;  %s588_s8 = sshll.u32 %s699_s6, 4  ;;  %s589_s8 = int_to_ptr.vmem [resolvable:$false] %s588_s8 }
  0x34   : > { %s590_s9 = scalar_lea.vmem %s589_s8, 512  ;;  %p591_p12 = scmp.lt.s32.totalorder %s165_s21, %s589_s8 }
  0x35   : > { %p586_p6 = pnand %p584_p3, %p572_p13  ;;  %p592_p5 = scmp.lt.s32.totalorder %s590_s9, %s583_s7 }
  0x37   : > { %p587_p9 = pneg %p586_p6  ;;  %p593_p4 = por %p592_p5, %p591_p12 }
  0x39   : > { %p594_p8 = pnand %p593_p4, %p587_p9 }
  0x3b   : > { %597 = shalt.err (!%p594_p8)
}
  0x3c   : > { %495 = dma.hbm_to_vmem [thread:$0]  (!%p824_p11), %s822_s11, 256, %s165_s21, %s153_s24  }
  0x3d   : > { %p953_p7 = scmp.ne.s32.totalorder %s947_s20, 0 }
  0x3e   : > { %s845_s10 = sand.u32 (!%p953_p7), 1, %s688_s13   ;;  %p954_p6 = scmp.ne.s32.totalorder (!%p953_p7), %s945_s18, 0 }
  0x3f   : > { %173 = sbr.rel (%p953_p7) target bundleno = 552 (0x228), region = 28  ;;  %s463_s17 = sshll.u32 (!%p953_p7), %s845_s10, 4 }
  0x40   : > { %s176_s25 = scalar_lea.sflag (!%p953_p7), [#allocation3], %s845_s10  ;;  %s179_s26 = scalar_lea.vmem (!%p953_p7), [#allocation2], %s463_s17 }
  0x44   : > { %667 = dma.done.wait (%p954_p6), %s176_s25, 256  }
  0x45   : > { %669 = vsyncadd (%p954_p6), %s176_s25, 4294967040  ;;  %p955_p4 = scmp.eq.s32.totalorder %s747_s16, 0 }
  0x47   : > { %671 = dma.done.wait (%p955_p4), [#allocation6], 32   ;;  %p956_p8 = pmov %p955_p4 }
  0x48   : > { %v266_v0 = vlaneseq  ;;  %v215_v2 = vld [vmem:[%s179_s26] sm:$0xff]  ;;  %s700_s20 = smov 16   ;;  %s701_s11 = smov 1   ;;  %v216_v5 = vld [vmem:[%s179_s26 + $0x8] sm:$0xff]  ;;  %vm223_vm0 = vcmask 130048   ;;  %vm233_vm1 = vcmask 7168  }
  0x49   : > { %673 = vsyncadd (%p956_p8), [#allocation6], 4294967264  ;;  %219 = vrot.lane.b32.xlu1 %v215_v2, %s700_s20  ;;  %229 = vrot.lane.b32.xlu0 %v215_v2, %s701_s11  ;;  %v211_v6 = vld [vmem:[#allocation5] sm:$0x3]  ;;  %s702_s18 = smov 112   ;;  %s703_s21 = smov 127  }
  0x4a   : > { %v267_v1 = vshrl.u32 %v266_v0, 7  ;;  %vm247_vm2 = vcmask 916480   ;;  %vm289_vm3 = vcmask 1039360   ;;  %s465_s22 = sshll.u32 %s845_s10, 3  ;;  %s469_s24 = sshll.u32 %s747_s16, 7 }
  0x4b   : > { %s203_s27 = scalar_lea.vmem [#allocation7], %s465_s22  ;;  %s861_s29 = scalar_lea.vmem [#allocation8], %s465_s22 }
  0x4c   : > { %v272_v3 = vsub.s32 1, %v267_v1  ;;  %v268_v4 = vsub.s32 0, %v267_v1  ;;  %s330_s28 = sshll.u32 %s203_s27, 4  ;;  %s343_s30 = sshll.u32 %s861_s29, 4  ;;  %s871_s28 = int_to_ptr.vmem [resolvable:$true] %s330_s28  ;;  %s873_s30 = int_to_ptr.vmem [resolvable:$true] %s343_s30 }
  0x4d   : > { %221 = vrot.lane.b32.xlu1 %v216_v5, %s700_s20  ;;  %231 = vrot.lane.b32.xlu0 %v216_v5, %s701_s11  ;;  %s869_s8 = scalar_lea.hbm %s939_s2, %s469_s24  ;;  %s312_s17 = scalar_lea.sflag [#allocation4], %s845_s10 }
  0x4e   : > { %v273_v7 = vrot.slane %v211_v6, %v272_v3  ;;  %v269_v8 = vrot.slane %v211_v6, %v268_v4  ;;  %s598_s25 = scalar_lea.vmem %s871_s28, 128  ;;  %p957_p11 = scmp.ne.s32.totalorder %s951_s5, 0 }
  0x4f   : > { %p599_p9 = scmp.ne.s32.totalorder %s871_s28, %s598_s25  ;;  %s704_s26 = smov [#allocation7]  }
  0x50   : > { %s602_s20 = sshll.u32 %s704_s26, 4  ;;  %s603_s20 = int_to_ptr.vmem [resolvable:$false] %s602_s20 }
  0x51   : > { %276 = vrot.lane.b32.xlu1 %v273_v7, %s701_s11  ;;  %274 = vrot.lane.b32.xlu0 %v269_v8, %s701_s11  ;;  %p600_p13 = pnand %p599_p9, %p957_p11  ;;  %s604_s11 = scalar_lea.vmem %s603_s20, 256 }
  0x52   : > { %p605_p1 = scmp.lt.s32.totalorder %s871_s28, %s603_s20  ;;  %p606_p2 = scmp.lt.s32.totalorder %s604_s11, %s598_s25 }
  0x53   : > { %p601_p10 = pneg %p600_p13 }
  0x54   : > { %p607_p0 = por %p606_p2, %p605_p1 }
  0x56   : > { %p608_p3 = pnand %p607_p0, %p601_p10 }
  0xbb   : > { %v220_v9 = vpop.permute.xlu1 %219  ;;  %v230_v10 = vpop.permute.xlu0 %229 }
  0xbc   : > { %v227_v11 = vsub.f32 %v215_v2, %v220_v9  ;;  %v237_v13 = vsub.f32 %v215_v2, %v230_v10 }
  0xbe   : > { %v239_v12 = vmul.f32 %v227_v11, %v227_v11  ;;  %v263_v20 = vmul.f32 %v237_v13, %v237_v13 }
  0xbf   : > { %v222_v14 = vpop.permute.xlu1 %221  ;;  %v232_v15 = vpop.permute.xlu0 %231 }
  0xc0   : > { %v224_v16 = vsel %vm223_vm0, %v220_v9, %v222_v14  ;;  %v234_v17 = vsel %vm233_vm1, %v230_v10, %v232_v15  ;;  %243 = vrot.lane.b32.xlu0 %v239_v12, %s702_s18 }
  0xc1   : > { %v228_v18 = vsub.f32 %v216_v5, %v224_v16  ;;  %v238_v19 = vsub.f32 %v216_v5, %v234_v17 }
  0xc3   : > { %v240_v21 = vmul.f32 %v228_v18, %v228_v18  ;;  %v264_v22 = vmul.f32 %v238_v19, %v238_v19  ;;  %v277_v23 = vpop.permute.xlu1 %276  ;;  %v275_v24 = vpop.permute.xlu0 %274 }
  0xc4   : > { %v278_v25 = vsel %vm233_vm1, %v275_v24, %v277_v23  ;;  %v281_v26 = vmul.f32 %v275_v24, %v263_v20 }
  0xc5   : > { %245 = vrot.lane.b32.xlu1 %v240_v21, %s702_s18  ;;  %v282_v27 = vmul.f32 %v278_v25, %v264_v22 }
  0xc6   : > { %285 = vrot.lane.b32.xlu0 %v281_v26, %s703_s21 }
  0xc9   : > { %287 = vrot.lane.b32.xlu1 %v282_v27, %s703_s21 }
 0x132   : > { %v244_v28 = vpop.permute.xlu0 %243 }
 0x137   : > { %v246_v29 = vpop.permute.xlu1 %245 }
 0x138   : > { %v248_v30 = vsel %vm247_vm2, %v244_v28, %v246_v29  ;;  %v251_v31 = vsel %vm247_vm2, %v246_v29, 0.0  ;;  %v286_v33 = vpop.permute.xlu0 %285 }
 0x139   : > { %v252_v32 = vadd.f32 %v251_v31, %v248_v30 }
 0x13b   : > { %v288_v34 = vpop.permute.xlu1 %287  ;;  %253 = vadd.xlane.f32.xlu0 %v252_v32 }
 0x13c   : > { %v290_v35 = vsel %vm289_vm3, %v286_v33, %v288_v34  ;;  %v293_v36 = vsel %vm289_vm3, %v288_v34, 0.0 }
 0x13d   : > { %v294_v37 = vadd.f32 %v293_v36, %v290_v35 }
 0x13f   : > { %295 = vadd.xlane.f32.xlu1 %v294_v37 }
 0x1c4   : > { %v254_v38 = vpop.xlane.xlu0 %253 }
 0x1c5   : > { %v255_v39 = vrot.slane %v254_v38, 4 }
 0x1c7   : > { %v256_v40 = vadd.f32 %v255_v39, %v254_v38 }
 0x1c8   : > { %v296_v41 = vpop.xlane.xlu1 %295 }
 0x1c9   : > { %v257_v42 = vrot.slane %v256_v40, 2  ;;  %v297_v43 = vrot.slane %v296_v41, 4 }
 0x1cb   : > { %v298_v44 = vadd.f32 %v297_v43, %v296_v41  ;;  %v258_v45 = vadd.f32 %v257_v42, %v256_v40 }
 0x1cd   : > { %v299_v46 = vrot.slane %v298_v44, 2  ;;  %v259_v47 = vrot.slane %v258_v45, 1 }
 0x1cf   : > { %v300_v48 = vadd.f32 %v299_v46, %v298_v44  ;;  %v260_v49 = vadd.f32 %v259_v47, %v258_v45 }
 0x1d1   : > { %474 = vpush %v260_v49  ;;  %v301_v50 = vrot.slane %v300_v48, 1 }
 0x1d3   : > { %v302_v51 = vadd.f32 %v301_v50, %v300_v48 }
 0x1d5   : > { %476 = vpush %v302_v51 }
 0x202   : > { %s475_s9 = spop %474 }
 0x203   : > { %v305_v52 = vstv %s475_s9 }
 0x204   : > { %307 = vst [vmem:[%s203_s27] sm:$0xff] %v305_v52 }
 0x205   : > { %611 = shalt.err (!%p608_p3)
}
 0x206   : > { %s612_s18 = scalar_lea.hbm %s869_s8, 128  ;;  %s616_s27 = scalar_lea.hbm %s939_s2, 256 }
 0x207   : > { %p613_p12 = scmp.ne.s32.totalorder %s869_s8, %s612_s18  ;;  %p617_p6 = scmp.lt.s32.totalorder %s869_s8, %s939_s2 }
 0x208   : > { %p618_p4 = scmp.lt.s32.totalorder %s616_s27, %s612_s18 }
 0x209   : > { %p614_p5 = pnand %p613_p12, %p957_p11 }
 0x20a   : > { %p619_p8 = por %p618_p4, %p617_p6 }
 0x20b   : > { %p615_p7 = pneg %p614_p5 }
 0x20d   : > { %p620_p9 = pnand %p619_p8, %p615_p7 }
 0x20f   : > { %623 = shalt.err (!%p620_p9)
}
 0x210   : > { %484 = dma.vmem_to_hbm [thread:$0]  (%p957_p11), %s871_s28, 128, %s869_s8, %s312_s17  }
 0x211   : > { %s477_s9 = spop %476  ;;  %s341_s20 = scalar_lea.hbm %s940_s3, %s469_s24 }
 0x212   : > { %v308_v53 = vstv %s477_s9  ;;  %s317_s11 = scalar_lea.sflag [#allocation9], %s845_s10  ;;  %s624_s18 = scalar_lea.vmem %s873_s30, 128 }
 0x213   : > { %310 = vst [vmem:[%s861_s29] sm:$0xff] %v308_v53  ;;  %p625_p13 = scmp.ne.s32.totalorder %s873_s30, %s624_s18  ;;  %s705_s21 = smov [#allocation8]  }
 0x214   : > { %s628_s22 = sshll.u32 %s705_s21, 4  ;;  %s629_s22 = int_to_ptr.vmem [resolvable:$false] %s628_s22 }
 0x215   : > { %p626_p10 = pnand %p625_p13, %p957_p11  ;;  %s630_s27 = scalar_lea.vmem %s629_s22, 256 }
 0x216   : > { %p631_p2 = scmp.lt.s32.totalorder %s873_s30, %s629_s22  ;;  %p632_p0 = scmp.lt.s32.totalorder %s630_s27, %s624_s18 }
 0x217   : > { %p627_p1 = pneg %p626_p10 }
 0x218   : > { %p633_p3 = por %p632_p0, %p631_p2 }
 0x21a   : > { %p634_p12 = pnand %p633_p3, %p627_p1 }
 0x21c   : > { %637 = shalt.err (!%p634_p12)
}
 0x21d   : > { %s638_s16 = scalar_lea.hbm %s341_s20, 128  ;;  %s642_s28 = scalar_lea.hbm %s940_s3, 256 }
 0x21e   : > { %p639_p5 = scmp.ne.s32.totalorder %s341_s20, %s638_s16  ;;  %p643_p4 = scmp.lt.s32.totalorder %s341_s20, %s940_s3 }
 0x21f   : > { %p644_p8 = scmp.lt.s32.totalorder %s642_s28, %s638_s16 }
 0x220   : > { %p640_p7 = pnand %p639_p5, %p957_p11 }
 0x221   : > { %p645_p9 = por %p644_p8, %p643_p4 }
 0x222   : > { %p641_p6 = pneg %p640_p7 }
 0x224   : > { %p646_p13 = pnand %p645_p9, %p641_p6 }
 0x226   : > { %649 = shalt.err (!%p646_p13)
}
 0x227   : > { %485 = dma.vmem_to_hbm [thread:$0]  (%p957_p11), %s873_s30, 128, %s341_s20, %s317_s11  }
 0x228 PF: > { %s355_s17 = sand.u32 1, %s684_s12   ;;  %p958_p10 = scmp.ne.s32.totalorder %s946_s19, 0 }
 0x229   : > { %p959_p1 = scmp.ge.s32.totalorder %s696_s15, 2  ;;  %s356_s7 = scalar_lea.sflag [#allocation4], %s355_s17 }
 0x22b   : > { %p497_p2 = pnand %p959_p1, %p958_p10 }
 0x22d   : > { %p498_p0 = pneg %p497_p2 }
 0x22f   : > { %675 = dma.done.wait (%p498_p0), %s356_s7, 128  }
 0x230   : > { %677 = vsyncadd (%p498_p0), %s356_s7, 4294967168  ;;  %s365_s6 = scalar_lea.sflag [#allocation9], %s355_s17 }
 0x231   : > { %679 = dma.done.wait (%p498_p0), %s365_s6, 128  }
 0x232   : > { %681 = vsyncadd (%p498_p0), %s365_s6, 4294967168  ;;  %p21_p11 = scmp.ge.s32.totalorder %s774_s23, 4   ;;  %s960_s12 = smov %s688_s13 }
 0x233   : > { %s961_s13 = smov %s692_s14  ;;  %s962_s14 = smov %s801_s4 }
 0x234   : > { %s963_s15 = smov %s774_s23  ;;  %23 = sbr.rel (!%p21_p11) target bundleno = 8 (0x8), region = 95 }
 0x239   :  { %370 = vsyncpa [#allocation3], 1 }
 0x23a   :  { %372 = vsyncpa [#allocation3 + $0x1], 1 }
 0x23b   :  { %373 = vsyncpa [#allocation6], 1 }
 0x23c   :  { %374 = vsyncpa [#allocation4], 1 }
 0x23d   :  { %376 = vsyncpa [#allocation4 + $0x1], 1 }
 0x23e   :  { %377 = vsyncpa [#allocation9], 1 }
 0x23f   :  { %379 = vsyncpa [#allocation9 + $0x1], 1 }

</bundles_post_ra>
